<compile_context>
chip_gen: v7x
topology: tpu7x:2x2x1
jax: 0.10.0
libtpu: 0.0.40
codegen_flags: <defaults>
</compile_context>

<pallas_src>
import functools

import jax
import jax.numpy as jnp
from jax import lax
from jax.experimental import pallas as pl
from jax.experimental.pallas import tpu as pltpu


# --------------------------------------------------------------------------- #
# helpers
# --------------------------------------------------------------------------- #
def _round_up(x: int, m: int) -> int:
    return ((x + m - 1) // m) * m


def _sublane_min(dtype) -> int:
    # Minimum second-to-last tile dim per element width (f32: 8, bf16: 16, i8: 32).
    return {4: 8, 2: 16, 1: 32}[jnp.dtype(dtype).itemsize]


def _pick_tile(dim128: int, max_tile: int) -> int:
    """dim128 is a dimension already rounded up to 128.  Returns the largest
    multiple of 128 that is <= max_tile and exactly divides dim128 (so the
    tile never introduces extra padded HBM traffic)."""
    max_tile = max(128, (max_tile // 128) * 128)
    if dim128 <= max_tile:
        return dim128
    t = max_tile
    while t > 128:
        if dim128 % t == 0:
            return t
        t -= 128
    return 128


_CONTRACT_RHS_DIM1 = (((1,), (1,)), ((), ()))   # x:(M,K) . W:(N,K) -> (M,N)


# --------------------------------------------------------------------------- #
# kernels
# --------------------------------------------------------------------------- #
def _fused_single_block_kernel(x_ref, w_ref, b_ref, o_ref, *, residual: bool):
    """Whole problem resident in VMEM: y = relu(x @ W.T + b) (+ x)."""
    y = lax.dot_general(x_ref[...], w_ref[...],
                        dimension_numbers=_CONTRACT_RHS_DIM1,
                        preferred_element_type=jnp.float32)
    y = y + b_ref[...].astype(jnp.float32)
    y = jnp.maximum(y, 0.0)
    if residual:
        # residual => in_size == out_size => K_pad == N_pad (asserted in wrapper)
        y = y + x_ref[...].astype(jnp.float32)
    o_ref[...] = y.astype(o_ref.dtype)


def _tiled_kernel(x_ref, w_ref, b_ref, *rest, residual: bool):
    """Grid point (i, j, k): accumulate x[i,k] @ W[j,k].T; finalize at last k."""
    if residual:
        xr_ref, o_ref, acc_ref = rest
    else:
        o_ref, acc_ref = rest

    k = pl.program_id(2)

    @pl.when(k == 0)
    def _init():
        # Fold the bias into the accumulator init (saves a zero fill + an add).
        acc_ref[...] = jnp.broadcast_to(b_ref[...].astype(jnp.float32),
                                        acc_ref.shape)

    acc_ref[...] += lax.dot_general(x_ref[...], w_ref[...],
                                    dimension_numbers=_CONTRACT_RHS_DIM1,
                                    preferred_element_type=jnp.float32)

    @pl.when(k == pl.num_programs(2) - 1)
    def _finalize():
        y = jnp.maximum(acc_ref[...], 0.0)        # ReLU
        if residual:                              # only when IN == OUT
            y = y + xr_ref[...].astype(jnp.float32)
        o_ref[...] = y.astype(o_ref.dtype)


# --------------------------------------------------------------------------- #
# wrapper
# --------------------------------------------------------------------------- #
_FAST_PATH_VMEM_BUDGET = 20 << 20   # double-buffered bytes allowed for grid=(1,)


def flexible_residual_block(x: jax.Array, w: jax.Array, b: jax.Array,
                            *, max_tile_m: int = 256, max_tile_n: int = 512,
                            max_tile_k: int = 1024,
                            fast_path_vmem_bytes: int = _FAST_PATH_VMEM_BUDGET
                            ) -> jax.Array:
    """x: (B, IN), w: (OUT, IN) [native PyTorch nn.Linear layout], b: (OUT,)."""
    B, in_size = x.shape
    out_size, in_size_w = w.shape
    assert in_size_w == in_size
    assert b.shape == (out_size,)

    residual = (in_size == out_size)
    itemsize = jnp.dtype(x.dtype).itemsize
    w_itemsize = jnp.dtype(w.dtype).itemsize
    sub = _sublane_min(x.dtype)

    K_128 = _round_up(in_size, 128)
    N_128 = _round_up(out_size, 128)

    # ------------------------------------------------------------------ #
    # Fast path: whole padded problem fits VMEM -> grid=(1,), no K loop.
    # ------------------------------------------------------------------ #
    M_fast = _round_up(B, sub)
    fast_bytes = (2 * (M_fast * K_128 * itemsize          # x (double-buffered)
                       + N_128 * K_128 * w_itemsize       # W
                       + N_128 * 4                        # bias
                       + M_fast * N_128 * itemsize)       # out
                  + M_fast * N_128 * 4)                   # f32 intermediate
    if fast_bytes <= fast_path_vmem_bytes:
        if residual:
            assert K_128 == N_128   # in_size == out_size
        x_p = x
        if (M_fast, K_128) != (B, in_size):
            x_p = jnp.pad(x, ((0, M_fast - B), (0, K_128 - in_size)))
        w_p = w
        if (N_128, K_128) != (out_size, in_size):
            w_p = jnp.pad(w, ((0, N_128 - out_size), (0, K_128 - in_size)))
        b_p = (b if N_128 == out_size
               else jnp.pad(b, (0, N_128 - out_size))).reshape(1, N_128)

        cost = pl.CostEstimate(
            flops=2 * M_fast * N_128 * K_128,
            transcendentals=0,
            bytes_accessed=(M_fast * K_128 * itemsize
                            + N_128 * K_128 * w_itemsize
                            + N_128 * 4
                            + M_fast * N_128 * itemsize))

        kernel = functools.partial(_fused_single_block_kernel,
                                   residual=residual)
        out = pl.pallas_call(
            kernel,
            out_shape=jax.ShapeDtypeStruct((M_fast, N_128), x.dtype),
            grid_spec=pltpu.PrefetchScalarGridSpec(
                num_scalar_prefetch=0,
                grid=(1,),
                in_specs=[pl.BlockSpec((M_fast, K_128), lambda i: (0, 0)),
                          pl.BlockSpec((N_128, K_128), lambda i: (0, 0)),
                          pl.BlockSpec((1, N_128), lambda i: (0, 0))],
                out_specs=pl.BlockSpec((M_fast, N_128), lambda i: (0, 0)),
            ),
            compiler_params=pltpu.CompilerParams(
                dimension_semantics=("arbitrary",),
                vmem_limit_bytes=int(min(max(fast_bytes + (8 << 20), 32 << 20),
                                         48 << 20))),
            cost_estimate=cost,
        )(x_p, w_p, b_p)
        if (M_fast, N_128) != (B, out_size):
            out = out[:B, :out_size]
        return out

    # ------------------------------------------------------------------ #
    # Tiled path: (M, N, K) grid with f32 VMEM accumulator.
    # ------------------------------------------------------------------ #
    tile_m = max(sub, min(_round_up(max_tile_m, sub), _round_up(B, sub)))
    tile_n = _pick_tile(N_128, max_tile_n)
    tile_k = _pick_tile(K_128, max_tile_k)

    M_pad = _round_up(B, tile_m)
    N_pad = N_128            # tile_n divides N_128 by construction
    K_pad = K_128            # tile_k divides K_128 by construction
    if residual:
        # The residual operand re-reads x blocked along N: needs K_pad == N_pad,
        # which holds because in_size == out_size (tile_k, tile_n independent).
        assert K_pad == N_pad

    x_p = x
    if (M_pad, K_pad) != (B, in_size):
        x_p = jnp.pad(x, ((0, M_pad - B), (0, K_pad - in_size)))
    w_p = w                                   # native (OUT, IN): no transpose
    if (N_pad, K_pad) != (out_size, in_size):
        w_p = jnp.pad(w, ((0, N_pad - out_size), (0, K_pad - in_size)))
    b_p = (b if N_pad == out_size
           else jnp.pad(b, (0, N_pad - out_size))).reshape(1, N_pad)

    grid = (M_pad // tile_m, N_pad // tile_n, K_pad // tile_k)

    in_specs = [
        pl.BlockSpec((tile_m, tile_k), lambda i, j, k: (i, k)),   # x (LHS)
        pl.BlockSpec((tile_n, tile_k), lambda i, j, k: (j, k)),   # W native layout
        pl.BlockSpec((1, tile_n), lambda i, j, k: (0, j)),        # bias tile
    ]
    operands = [x_p, w_p, b_p]
    if residual:
        # Same padded x, blocked along N for the residual add.
        in_specs.append(pl.BlockSpec((tile_m, tile_n), lambda i, j, k: (i, j)))
        operands.append(x_p)

    block_bytes = (2 * (tile_m * tile_k * itemsize            # x  (x2 buffers)
                        + tile_n * tile_k * w_itemsize        # W
                        + tile_n * 4                          # bias
                        + (tile_m * tile_n * itemsize if residual else 0))
                   + 2 * tile_m * tile_n * itemsize           # out (x2 buffers)
                   + tile_m * tile_n * 4)                     # acc scratch
    vmem_limit = int(min(max(block_bytes + (8 << 20), 32 << 20), 48 << 20))

    cost = pl.CostEstimate(
        flops=2 * M_pad * N_pad * K_pad,
        transcendentals=0,
        bytes_accessed=((M_pad // tile_m) * N_pad * K_pad * w_itemsize   # W streamed per M row
                        + (N_pad // tile_n) * M_pad * K_pad * itemsize   # x streamed per N col
                        + M_pad * N_pad * itemsize
                        + (M_pad * N_pad * itemsize if residual else 0)))

    kernel = functools.partial(_tiled_kernel, residual=residual)
    out = pl.pallas_call(
        kernel,
        out_shape=jax.ShapeDtypeStruct((M_pad, N_pad), x.dtype),
        grid_spec=pltpu.PrefetchScalarGridSpec(
            num_scalar_prefetch=0,
            grid=grid,
            in_specs=in_specs,
            out_specs=pl.BlockSpec((tile_m, tile_n), lambda i, j, k: (i, j)),
            scratch_shapes=[pltpu.VMEM((tile_m, tile_n), jnp.float32)],
        ),
        compiler_params=pltpu.CompilerParams(
            dimension_semantics=("parallel", "parallel", "arbitrary"),
            vmem_limit_bytes=vmem_limit),
        cost_estimate=cost,
    )(*operands)

    if (M_pad, N_pad) != (B, out_size):
        out = out[:B, :out_size]
    return out


# --------------------------------------------------------------------------- #
# reference + demo
# --------------------------------------------------------------------------- #
def _reference(x, w, b):
    y = jnp.maximum(x @ w.T + b, 0.0)
    if w.shape[0] == w.shape[1]:       # input_size == output_size -> residual
        y = x + y
    return y


if __name__ == "__main__":
    key = jax.random.PRNGKey(0)
    ks = jax.random.split(key, 12)

    # --- Case 1: residual path, tiny shapes (fast path, grid=(1,)) ----------
    batch, in_size, hidden = 8, 32, 64
    x1 = jax.random.normal(ks[0], (batch, in_size), dtype=jnp.float32)
    w1 = jax.random.normal(ks[1], (in_size, in_size), dtype=jnp.float32) * 0.1
    b1 = jax.random.normal(ks[2], (in_size,), dtype=jnp.float32) * 0.1
    y1 = jax.block_until_ready(flexible_residual_block(x1, w1, b1))

    # --- Case 2: plain MLP layer (in != out), tiny shapes (fast path) -------
    w2 = jax.random.normal(ks[3], (hidden, in_size), dtype=jnp.float32) * 0.1
    b2 = jax.random.normal(ks[4], (hidden,), dtype=jnp.float32) * 0.1
    y2 = jax.block_until_ready(flexible_residual_block(x1, w2, b2))

    # --- Case 3: medium residual layer -> now handled by the fast path ------
    B3, D3 = 256, 384
    x3 = jax.random.normal(ks[5], (B3, D3), dtype=jnp.float32)
    w3 = jax.random.normal(ks[6], (D3, D3), dtype=jnp.float32) * 0.05
    b3 = jax.random.normal(ks[7], (D3,), dtype=jnp.float32) * 0.05
    y3 = jax.block_until_ready(flexible_residual_block(x3, w3, b3))

    # --- Case 4: residual, force tiled path (K accumulation, bias-in-init) --
    B4, D4 = 128, 512
    x4 = jax.random.normal(ks[8], (B4, D4), dtype=jnp.float32)
    w4 = jax.random.normal(ks[9], (D4, D4), dtype=jnp.float32) * 0.05
    b4 = jax.random.normal(ks[10], (D4,), dtype=jnp.float32) * 0.05
    y4 = jax.block_until_ready(flexible_residual_block(
        x4, w4, b4, max_tile_n=256, max_tile_k=256, fast_path_vmem_bytes=0))

    # --- Case 5: non-residual, force tiled path (in=512 -> out=256) ---------
    B5 = 64
    x5 = jax.random.normal(ks[11], (B5, D4), dtype=jnp.float32)
    w5 = jax.random.normal(ks[9], (256, D4), dtype=jnp.float32) * 0.05
    b5 = jax.random.normal(ks[10], (256,), dtype=jnp.float32) * 0.05
    y5 = jax.block_until_ready(flexible_residual_block(
        x5, w5, b5, max_tile_k=256, fast_path_vmem_bytes=0))

    # Correctness checks against pure-JAX reference.
    assert y1.shape == (batch, in_size)
    assert y2.shape == (batch, hidden)
    assert y3.shape == (B3, D3)
    assert y4.shape == (B4, D4)
    assert y5.shape == (B5, 256)
    assert jnp.allclose(y1, _reference(x1, w1, b1), atol=1e-5, rtol=1e-5)
    assert jnp.allclose(y2, _reference(x1, w2, b2), atol=1e-5, rtol=1e-5)
    assert jnp.allclose(y3, _reference(x3, w3, b3), atol=2e-4, rtol=2e-4)
    assert jnp.allclose(y4, _reference(x4, w4, b4), atol=5e-4, rtol=5e-4)
    assert jnp.allclose(y5, _reference(x5, w5, b5), atol=5e-4, rtol=5e-4)

    print("KERNEL_OK")
</pallas_src>

<mosaic_0001>
module attributes {stable_mosaic.version = 11 : i64} {
  func.func @_fused_single_block_kernel(%arg0: i32, %arg1: memref<8x128xf32, #tpu.memory_space<vmem>>, %arg2: memref<128x128xf32, #tpu.memory_space<vmem>>, %arg3: memref<1x128xf32, #tpu.memory_space<vmem>>, %arg4: memref<8x128xf32, #tpu.memory_space<vmem>>) attributes {dimension_semantics = [#tpu.dimension_semantics<arbitrary>], iteration_bounds = array<i64: 1>, scalar_prefetch = 0 : i64, scratch_operands = 0 : i64, tpu.core_type = #tpu.core_type<tc>, window_params = [{pipeline_mode = #tpu.pipeline_mode<synchronous>, transform_indices = @transform_0, window_bounds = array<i64: 8, 128>}, {pipeline_mode = #tpu.pipeline_mode<synchronous>, transform_indices = @transform_1, window_bounds = array<i64: 128, 128>}, {pipeline_mode = #tpu.pipeline_mode<synchronous>, transform_indices = @transform_2, window_bounds = array<i64: 1, 128>}, {pipeline_mode = #tpu.pipeline_mode<synchronous>, transform_indices = @transform_3, window_bounds = array<i64: 8, 128>}]} {
    %c0 = arith.constant 0 : index
    %c0_0 = arith.constant 0 : index
    %0 = vector.load %arg1[%c0, %c0_0] : memref<8x128xf32, #tpu.memory_space<vmem>>, vector<8x128xf32>
    %c0_1 = arith.constant 0 : index
    %c0_2 = arith.constant 0 : index
    %1 = vector.load %arg2[%c0_1, %c0_2] : memref<128x128xf32, #tpu.memory_space<vmem>>, vector<128x128xf32>
    %cst = arith.constant dense<0.000000e+00> : vector<8x128xf32>
    %2 = tpu.matmul %0, %1, %cst {dimension_numbers = #tpu.dot_dimension_numbers<[1], [1], [0], [0], [0, 0, 1, 0], [], []>} : vector<8x128xf32>, vector<128x128xf32>, vector<8x128xf32> -> vector<8x128xf32>
    %c0_3 = arith.constant 0 : index
    %c0_4 = arith.constant 0 : index
    %3 = vector.load %arg3[%c0_3, %c0_4] : memref<1x128xf32, #tpu.memory_space<vmem>>, vector<1x128xf32>
    %4 = vector.broadcast %3 : vector<1x128xf32> to vector<8x128xf32>
    %5 = arith.addf %2, %4 : vector<8x128xf32>
    %cst_5 = arith.constant 0.000000e+00 : f32
    %6 = vector.broadcast %cst_5 : f32 to vector<8x128xf32>
    %7 = arith.maximumf %5, %6 : vector<8x128xf32>
    %c0_6 = arith.constant 0 : index
    %c0_7 = arith.constant 0 : index
    %8 = vector.load %arg1[%c0_6, %c0_7] : memref<8x128xf32, #tpu.memory_space<vmem>>, vector<8x128xf32>
    %9 = arith.addf %7, %8 : vector<8x128xf32>
    %c0_8 = arith.constant 0 : index
    %c0_9 = arith.constant 0 : index
    %10 = vector.load %arg4[%c0_8, %c0_9] : memref<8x128xf32, #tpu.memory_space<vmem>>, vector<8x128xf32>
    tpu.vector_store %arg4[%c0_8, %c0_9], %9 {strides = array<i32>} : memref<8x128xf32, #tpu.memory_space<vmem>>, vector<8x128xf32>,
    return
  }
  func.func @transform_0(%arg0: i32) -> (i32, i32) {
    %c0_i32 = arith.constant 0 : i32
    %c0_i32_0 = arith.constant 0 : i32
    %c0_i32_1 = arith.constant 0 : i32
    return %c0_i32, %c0_i32_0 : i32, i32
  }
  func.func @transform_1(%arg0: i32) -> (i32, i32) {
    %c0_i32 = arith.constant 0 : i32
    %c0_i32_0 = arith.constant 0 : i32
    %c0_i32_1 = arith.constant 0 : i32
    return %c0_i32, %c0_i32_0 : i32, i32
  }
  func.func @transform_2(%arg0: i32) -> (i32, i32) {
    %c0_i32 = arith.constant 0 : i32
    %c0_i32_0 = arith.constant 0 : i32
    %c0_i32_1 = arith.constant 0 : i32
    return %c0_i32, %c0_i32_0 : i32, i32
  }
  func.func @transform_3(%arg0: i32) -> (i32, i32) {
    %c0_i32 = arith.constant 0 : i32
    %c0_i32_0 = arith.constant 0 : i32
    %c0_i32_1 = arith.constant 0 : i32
    return %c0_i32, %c0_i32_0 : i32, i32
  }
}

</mosaic_0001>

<bundles_post_ra>
// kernel: tpu_custom_call.1
= control target key start
LH: loop header
LB: loop body
LE: loop exit
PB: predicated region body
PF: predicated region fallthrough
CT: control target
= control target key end

     0   :  { %8 = vsyncpa [#allocation3], 0  ;;  %s385_s0 = inlined_call_operand.hbm [shape: f32[8,128], index: 0, kind: input, shape index: {}]   ;;  %s386_s1 = inlined_call_operand.hbm [shape: f32[128,128], index: 1, kind: input, shape index: {}]   ;;  %s387_s2 = inlined_call_operand.vmem [shape: f32[1,128], index: 2, kind: input, shape index: {}]   ;;  %s388_s3 = inlined_call_operand.hbm [shape: f32[8,128], index: 3, kind: output, shape index: {}]  }
   0x1   :  { %9 = vsyncpa [#allocation6], 0 }
   0x2   :  { %10 = vsyncpa [#allocation4], 0  ;;  %s311_s12 = smov [#allocation2]   ;;  %s312_s14 = smov [#allocation5]  }
   0x3   :  { %s17_s13 = sshll.u32 %s311_s12, 4  ;;  %s26_s15 = sshll.u32 %s312_s14, 4  ;;  %s18_s13 = int_to_ptr.vmem [resolvable:$true] %s17_s13  ;;  %s339_s15 = int_to_ptr.vmem [resolvable:$true] %s26_s15 }
   0x4   :  { %s239_s18 = scalar_lea.hbm %s385_s0, 128 }
   0x5   :  { %p240_p0 = scmp.ne.s32.totalorder %s385_s0, %s239_s18  ;;  %p243_p1 = scmp.lt.u32.totalorder %s239_s18, %s385_s0 }
   0x7   :  { %p245_p2 = pnand %p243_p1, %p240_p0 }
   0x9   :  { %248 = shalt.err (!%p245_p2)
}
   0xa   :  { %s249_s23 = scalar_lea.vmem %s18_s13, 128  ;;  %p254_p4 = scmp.lt.s32.totalorder %s18_s13, %s18_s13 }
   0xb   :  { %p250_p3 = scmp.ne.s32.totalorder %s18_s13, %s249_s23  ;;  %p255_p5 = scmp.lt.s32.totalorder %s249_s23, %s249_s23 }
   0xd   :  { %p256_p6 = por %p255_p5, %p254_p4 }
   0xf   :  { %p257_p7 = pnand %p256_p6, %p250_p3 }
  0x11   :  { %260 = shalt.err (!%p257_p7)
}
  0x12   :  { %20 = dma.hbm_to_vmem [thread:$0]  %s385_s0, 128, %s18_s13, [#allocation3]  }
  0x13   :  { %s261_s28 = scalar_lea.hbm %s386_s1, 2048 }
  0x14   :  { %p262_p8 = scmp.ne.s32.totalorder %s386_s1, %s261_s28  ;;  %p265_p9 = scmp.lt.u32.totalorder %s261_s28, %s386_s1 }
  0x16   :  { %p267_p10 = pnand %p265_p9, %p262_p8 }
  0x18   :  { %270 = shalt.err (!%p267_p10)
}
  0x19   :  { %s271_s6 = scalar_lea.vmem %s339_s15, 2048  ;;  %p276_p12 = scmp.lt.s32.totalorder %s339_s15, %s339_s15 }
  0x1a   :  { %p272_p11 = scmp.ne.s32.totalorder %s339_s15, %s271_s6  ;;  %p277_p13 = scmp.lt.s32.totalorder %s271_s6, %s271_s6 }
  0x1c   :  { %p278_p0 = por %p277_p13, %p276_p12 }
  0x1e   :  { %p279_p1 = pnand %p278_p0, %p272_p11 }
  0x20   :  { %282 = shalt.err (!%p279_p1)
}
  0x21   :  { %s313_s0 = smov 128   ;;  %s314_s7 = smov 8  }
  0x22   :  { %32 = dma.hbm_to_vmem [thread:$0]  %s386_s1, 2048, %s339_s15, [#allocation6], %s313_s0, %s313_s0, %s314_s7  }
  0x23   :  { %305 = dma.done.wait [#allocation3], 128  }
  0x24   :  { %306 = vsyncadd [#allocation3], 4294967168 }
  0x25   :  { %307 = dma.done.wait [#allocation6], 2048  }
  0x26   :  { %308 = vsyncadd [#allocation6], 4294965248  ;;  %v315_v0 = vmov 0.0|0.0   ;;  %vm316_vm0 = vmmov 0   ;;  %v317_v1 = vmov 0.0   ;;  %v42_v2 = vld [vmem:[#allocation5] sm:$0xff] }
  0x27   :  { %207 = vmatprep.subr.bf16.mxu0 %v315_v0  ;;  %204 = vmatprep.mubr.msk.f32.mxu0 %vm316_vm0, %v317_v1  ;;  %v43_v3 = vld [vmem:[#allocation5 + $0x8] sm:$0xff]  ;;  %v44_v5 = vld [vmem:[#allocation5 + $0x10] sm:$0xff]  ;;  %v45_v6 = vld [vmem:[#allocation5 + $0x18] sm:$0xff]  ;;  %s318_s11 = smov [#allocation7]  }
  0x28   :  { %v208_v4 = vpack.c.bf16 %v43_v3, %v42_v2  ;;  %v211_v7 = vpack.c.bf16 %v45_v6, %v44_v5  ;;  %v46_v8 = vld [vmem:[#allocation5 + $0x20] sm:$0xff]  ;;  %v47_v9 = vld [vmem:[#allocation5 + $0x28] sm:$0xff]  ;;  %v48_v11 = vld [vmem:[#allocation5 + $0x30] sm:$0xff]  ;;  %s144_s12 = sshll.u32 %s318_s11, 4  ;;  %s145_s12 = int_to_ptr.vmem [resolvable:$true] %s144_s12 }
  0x29   :  { %v214_v10 = vpack.c.bf16 %v47_v9, %v46_v8  ;;  %v49_v12 = vld [vmem:[#allocation5 + $0x38] sm:$0xff]  ;;  %v50_v14 = vld [vmem:[#allocation5 + $0x40] sm:$0xff]  ;;  %v51_v15 = vld [vmem:[#allocation5 + $0x48] sm:$0xff]  ;;  %s283_s13 = scalar_lea.vmem %s145_s12, 128  ;;  %p288_p3 = scmp.lt.s32.totalorder %s145_s12, %s145_s12 }
  0x2a   :  { %209 = vmatpush3.bf16.xpose.msra.mxu0 %v208_v4  ;;  %v217_v13 = vpack.c.bf16 %v49_v12, %v48_v11  ;;  %v220_v16 = vpack.c.bf16 %v51_v15, %v50_v14  ;;  %v52_v17 = vld [vmem:[#allocation5 + $0x50] sm:$0xff]  ;;  %v53_v18 = vld [vmem:[#allocation5 + $0x58] sm:$0xff]  ;;  %v54_v20 = vld [vmem:[#allocation5 + $0x60] sm:$0xff]  ;;  %p284_p2 = scmp.ne.s32.totalorder %s145_s12, %s283_s13  ;;  %p289_p4 = scmp.lt.s32.totalorder %s283_s13, %s283_s13 }
  0x2b   :  { %210 = vmatprep.subr.bf16.mxu0 %v315_v0  ;;  %v223_v19 = vpack.c.bf16 %v53_v18, %v52_v17  ;;  %v55_v21 = vld [vmem:[#allocation5 + $0x68] sm:$0xff]  ;;  %v56_v23 = vld [vmem:[#allocation5 + $0x70] sm:$0xff]  ;;  %v57_v24 = vld [vmem:[#allocation5 + $0x78] sm:$0xff] }
  0x2c   :  { %v226_v22 = vpack.c.bf16 %v55_v21, %v54_v20  ;;  %v229_v25 = vpack.c.bf16 %v57_v24, %v56_v23  ;;  %v41_v26 = vld [vmem:[#allocation2] sm:$0xff]  ;;  %p290_p5 = por %p289_p4, %p288_p3 }
  0x2d   :  { %v154_v27 = vld [vmem:[%s387_s2] ss:$0 sm:$0xff] }
  0x2e   :  { %p291_p6 = pnand %p290_p5, %p284_p2 }
  0x32   :  { %212 = vmatpush3.bf16.xpose.msra.mxu0 %v211_v7 }
  0x33   :  { %213 = vmatprep.subr.bf16.mxu0 %v315_v0 }
  0x3a   :  { %215 = vmatpush3.bf16.xpose.msra.mxu0 %v214_v10 }
  0x3b   :  { %216 = vmatprep.subr.bf16.mxu0 %v315_v0 }
  0x42   :  { %218 = vmatpush3.bf16.xpose.msra.mxu0 %v217_v13 }
  0x43   :  { %219 = vmatprep.subr.bf16.mxu0 %v315_v0 }
  0x4a   :  { %221 = vmatpush3.bf16.xpose.msra.mxu0 %v220_v16 }
  0x4b   :  { %222 = vmatprep.subr.bf16.mxu0 %v315_v0 }
  0x52   :  { %224 = vmatpush3.bf16.xpose.msra.mxu0 %v223_v19 }
  0x53   :  { %225 = vmatprep.subr.bf16.mxu0 %v315_v0 }
  0x5a   :  { %227 = vmatpush3.bf16.xpose.msra.mxu0 %v226_v22 }
  0x5b   :  { %228 = vmatprep.subr.bf16.mxu0 %v315_v0 }
  0x62   :  { %230 = vmatpush3.bf16.xpose.msra.mxu0 %v229_v25 }
  0x69   :  { %205 = vmatmul.mubr.f32.vlgmr.msra.gmra.mrb[0].mxu0 %v41_v26 }
 0x13c   :  { %v131_v28 = vpop.f32.mrb[0].mxu0 }
 0x13d   :  { %v132_v29 = vadd.f32 %v154_v27, %v131_v28  ;;  %v206_v30 = vpop.f32.mrb[1].mxu0 }
 0x13f   :  { %v135_v31 = vmax.f32 %v132_v29, 0.0 }
 0x141   :  { %v136_v32 = vadd.f32 %v135_v31, %v41_v26 }
 0x143   :  { %137 = vst [vmem:[#allocation7] sm:$0xff] %v136_v32 }
 0x144   :  { %294 = shalt.err (!%p291_p6)
}
 0x145   :  { %s295_s2 = scalar_lea.hbm %s388_s3, 128 }
 0x146   :  { %p296_p7 = scmp.ne.s32.totalorder %s388_s3, %s295_s2  ;;  %p299_p8 = scmp.lt.u32.totalorder %s295_s2, %s388_s3 }
 0x148   :  { %p301_p9 = pnand %p299_p8, %p296_p7 }
 0x14a   :  { %304 = shalt.err (!%p301_p9)
}
 0x14b   :  { %147 = dma.vmem_to_hbm [thread:$0]  %s145_s12, 128, %s388_s3, [#allocation4]  }
 0x14c   :  { %309 = dma.done.wait [#allocation4], 128  }
 0x14d   :  { %310 = vsyncadd [#allocation4], 4294967168 }
 0x14e   :  { %151 = vsyncpa [#allocation3], 1 }
 0x14f   :  { %152 = vsyncpa [#allocation6], 1 }
 0x150   :  { %153 = vsyncpa [#allocation4], 1 }

</bundles_post_ra>
